<compile_context>
chip_gen: v7x
topology: tpu7x:2x2x1
jax: 0.10.0
libtpu: 0.0.40
codegen_flags: <defaults>
</compile_context>

<pallas_src>
import functools

import jax
import jax.numpy as jnp
import numpy as np
from jax.experimental import pallas as pl
from jax.experimental.pallas import tpu as pltpu


# ----------------------------------------------------------------------------
# Small helpers: padding, VMEM budgets, tile selection
# ----------------------------------------------------------------------------
def _round_up(x, m):
    return (x + m - 1) // m * m


def _pad_nodes(n):
    # Pad node counts so large tiles divide the padded extent once the graph is
    # big enough to amortize the padding.
    if n >= 4096:
        return _round_up(n, 512)
    if n >= 1024:
        return _round_up(n, 256)
    return _round_up(n, 128)


@functools.lru_cache(maxsize=1)
def _vmem_limit_bytes():
    """Per-generation scoped-VMEM request: ~96 MiB on 128 MiB parts (v5e/v6e),
    ~48 MiB on 64 MiB parts (v7x)."""
    cap = None
    try:
        cap = pltpu.get_tpu_info().vmem_capacity_bytes
    except Exception:
        cap = None
    if not cap:
        cap = 64 * 1024 * 1024          # conservative (v7x per-core VMEM)
    return int(min(cap * 3 // 4, 100 * 1024 * 1024))


_TILE_M_CANDIDATES = (1024, 512, 256, 128)
_TILE_K_CANDIDATES = (2048, 1024, 512, 256, 128)


def _agg_footprint(tile_m, tile_k, d_out_p, out_bytes, a_buffers):
    return (tile_m * tile_k * 2 * a_buffers      # A'_b tiles (bf16)
            + tile_k * d_out_p * 2 * 2           # HW_b tiles (bf16, double-buffered)
            + tile_m * d_out_p * 4               # f32 accumulator scratch
            + tile_m * d_out_p * out_bytes * 2   # output blocks
            + d_out_p * 4 * 2)                   # bias


def _combine_footprint(tile_m, tile_k, n_bases):
    return (tile_m * tile_k * 2 * 2              # A_r tiles (bf16, double-buffered)
            + n_bases * tile_m * tile_k * 2 * 2  # A'_b output blocks (bf16)
            + n_bases * tile_m * tile_k * 4)     # f32 accumulator scratch


def _choose_tiles_2d(n_rows_p, n_cols_p, footprint, budget):
    best = (128, 128)
    for tm in _TILE_M_CANDIDATES:
        if n_rows_p % tm:
            continue
        for tk in _TILE_K_CANDIDATES:
            if n_cols_p % tk:
                continue
            if footprint(tm, tk) <= budget and tm * tk > best[0] * best[1]:
                best = (tm, tk)
    return best


def _choose_proj_tile(n_src_p, d_in_p, d_out_p, n_bases, budget):
    for tn in _TILE_K_CANDIDATES:
        if n_src_p % tn:
            continue
        need = (tn * d_in_p * 2 * 2                  # H tile (bf16)
                + n_bases * tn * d_out_p * 2 * 2     # HW output block (bf16)
                + n_bases * d_in_p * d_out_p * 2 * 2)  # all-B bases block (bf16)
        if need <= budget:
            return tn
    return 128


def _maybe_buffered_spec(block_shape, index_map, buffer_count):
    """A-stream BlockSpec; triple-buffered when requested & supported (hides the
    exposed adjacency DMA on low-bandwidth parts such as v5e)."""
    if buffer_count > 2 and hasattr(pl, "Buffered"):
        try:
            return pl.BlockSpec(block_shape, index_map,
                                pipeline_mode=pl.Buffered(buffer_count))
        except TypeError:
            pass
    return pl.BlockSpec(block_shape, index_map)


# ----------------------------------------------------------------------------
# Graph preprocessing (hoisted out of the per-layer / per-step hot path)
# ----------------------------------------------------------------------------
def pad_adjacency(adj):
    """Pad a [R, N_dst, N_src] f32 per-relation adjacency to lane-aligned bf16.
    Compute once per graph and reuse across forward calls / training steps."""
    num_rels, n_dst, n_src = adj.shape
    n_dst_p = _pad_nodes(n_dst)
    n_src_p = _pad_nodes(n_src)
    return (jnp.zeros((num_rels, n_dst_p, n_src_p), jnp.bfloat16)
            .at[:, :n_dst, :n_src].set(adj.astype(jnp.bfloat16)))


# ----------------------------------------------------------------------------
# Pallas kernel 1: basis projection   HW_b = H @ V_b   (all B bases resident,
# H and the bases each streamed exactly once; bf16 output)
# ----------------------------------------------------------------------------
def _basis_project_kernel(h_ref, v_ref, o_ref, *, n_bases):
    h = h_ref[...]                                   # (tile_n, d_in_p) bf16
    for b in range(n_bases):                         # static B, B small
        o_ref[b] = jnp.dot(h, v_ref[b],
                           preferred_element_type=jnp.float32).astype(o_ref.dtype)


def basis_project(h_p, bases_p, *, tile_n, vmem_limit):
    n_src_p, d_in_p = h_p.shape
    n_bases, _, d_out_p = bases_p.shape
    kernel = functools.partial(_basis_project_kernel, n_bases=n_bases)
    return pl.pallas_call(
        kernel,
        out_shape=jax.ShapeDtypeStruct((n_bases, n_src_p, d_out_p), jnp.bfloat16),
        grid_spec=pltpu.PrefetchScalarGridSpec(
            num_scalar_prefetch=0,
            grid=(n_src_p // tile_n,),
            in_specs=[
                pl.BlockSpec((tile_n, d_in_p), lambda s: (s, 0)),            # H tile
                pl.BlockSpec((n_bases, d_in_p, d_out_p), lambda s: (0, 0, 0)),  # all V_b
            ],
            out_specs=pl.BlockSpec((n_bases, tile_n, d_out_p), lambda s: (0, s, 0)),
        ),
        compiler_params=pltpu.CompilerParams(
            dimension_semantics=("parallel",),
            vmem_limit_bytes=vmem_limit,
        ),
    )(h_p, bases_p)


# ----------------------------------------------------------------------------
# Pallas kernel 2: per-basis adjacency combine   A'_b = sum_r coeff[r,b] * A_r
# (coeff in SMEM, f32 accumulation over the R reduction axis, bf16 output)
# ----------------------------------------------------------------------------
def _combine_adj_kernel(coeff_ref, adj_ref, out_ref, acc_ref, *, n_bases):
    r = pl.program_id(2)

    @pl.when(r == 0)
    def _():
        acc_ref[...] = jnp.zeros_like(acc_ref)

    a = adj_ref[0].astype(jnp.float32)               # (tile_m, tile_k)
    for b in range(n_bases):                         # static B
        acc_ref[b] += coeff_ref[r * n_bases + b] * a

    @pl.when(r == pl.num_programs(2) - 1)
    def _():
        out_ref[...] = acc_ref[...].astype(out_ref.dtype)


def combine_adjacency(adj_p, coeff, *, tile_m, tile_k, vmem_limit):
    num_rels, n_dst_p, n_src_p = adj_p.shape
    n_bases = coeff.shape[1]
    coeff_flat = coeff.reshape(-1).astype(jnp.float32)   # 1-D layout avoids SMEM 2-D padding
    kernel = functools.partial(_combine_adj_kernel, n_bases=n_bases)
    return pl.pallas_call(
        kernel,
        out_shape=jax.ShapeDtypeStruct((n_bases, n_dst_p, n_src_p), jnp.bfloat16),
        grid_spec=pltpu.PrefetchScalarGridSpec(
            num_scalar_prefetch=0,
            grid=(n_dst_p // tile_m, n_src_p // tile_k, num_rels),
            in_specs=[
                pl.BlockSpec(memory_space=pltpu.MemorySpace.SMEM),             # coeff
                pl.BlockSpec((1, tile_m, tile_k), lambda i, k, r: (r, i, k)),  # A_r tile
            ],
            out_specs=pl.BlockSpec((n_bases, tile_m, tile_k),
                                   lambda i, k, r: (0, i, k)),
            scratch_shapes=[pltpu.VMEM((n_bases, tile_m, tile_k), jnp.float32)],
        ),
        compiler_params=pltpu.CompilerParams(
            dimension_semantics=("parallel", "parallel", "arbitrary"),
            vmem_limit_bytes=vmem_limit,
        ),
    )(coeff_flat, adj_p)


# ----------------------------------------------------------------------------
# Pallas kernel 3: fused aggregation (long-K tiled matmul over the B bases)
#   out[v,:] = sum_{b, src_tile} A'_b[v_tile, src_tile] @ HW_b[src_tile, :]
#              + bias   (+ relu)
# Grid = (dst_tiles [parallel / CORE_PARALLEL on v7x], B, src_tiles).
# ----------------------------------------------------------------------------
def _aggregate_kernel(a_ref, hw_ref, bias_ref, o_ref, acc_ref, *, apply_relu):
    b = pl.program_id(1)
    k = pl.program_id(2)

    @pl.when((b == 0) & (k == 0))
    def _():
        acc_ref[...] = jnp.zeros_like(acc_ref)

    # bf16 x bf16 -> f32 accumulate on the MXU
    acc_ref[...] += jnp.dot(a_ref[0], hw_ref[0], preferred_element_type=jnp.float32)

    @pl.when((b == pl.num_programs(1) - 1) & (k == pl.num_programs(2) - 1))
    def _():
        res = acc_ref[...] + bias_ref[...]
        if apply_relu:
            res = jnp.maximum(res, 0.0)
        o_ref[...] = res.astype(o_ref.dtype)


def rgcn_aggregate(adj_b, hw, bias_p, *, apply_relu, out_dtype, tile_m, tile_k,
                   a_buffers, vmem_limit, core_parallel=False):
    n_bases, n_dst_p, n_src_p = adj_b.shape
    d_out_p = hw.shape[2]
    kernel = functools.partial(_aggregate_kernel, apply_relu=apply_relu)
    a_spec = _maybe_buffered_spec((1, tile_m, tile_k),
                                  lambda i, b, k: (b, i, k), a_buffers)
    if core_parallel:
        dims = (pltpu.CORE_PARALLEL, pltpu.ARBITRARY, pltpu.ARBITRARY)
    else:
        dims = ("parallel", "arbitrary", "arbitrary")
    return pl.pallas_call(
        kernel,
        out_shape=jax.ShapeDtypeStruct((n_dst_p, d_out_p), out_dtype),
        grid_spec=pltpu.PrefetchScalarGridSpec(
            num_scalar_prefetch=0,
            grid=(n_dst_p // tile_m, n_bases, n_src_p // tile_k),
            in_specs=[
                a_spec,                                                        # A'_b tile
                pl.BlockSpec((1, tile_k, d_out_p), lambda i, b, k: (b, k, 0)),  # HW_b
                pl.BlockSpec((1, d_out_p), lambda i, b, k: (0, 0)),             # bias
            ],
            out_specs=pl.BlockSpec((tile_m, d_out_p), lambda i, b, k: (i, 0)),
            # f32 scratch kept because the (intermediate-layer) output is bf16.
            scratch_shapes=[pltpu.VMEM((tile_m, d_out_p), jnp.float32)],
        ),
        compiler_params=pltpu.CompilerParams(
            dimension_semantics=dims,
            vmem_limit_bytes=vmem_limit,
        ),
    )(adj_b, hw, bias_p)


# ----------------------------------------------------------------------------
# One RelGraphConv layer (basis decomposition).  Takes / returns PADDED tensors.
# ----------------------------------------------------------------------------
def rgcn_layer(adj_p, h_p, bases, coeff, bias, *, apply_relu, out_dtype,
               core_parallel=False):
    """adj_p: [R, n_dst_p, n_src_p] bf16 (padded), h_p: [n_src_p, d_in_p] bf16 (padded),
    bases: [B, d_in, d_out] f32, coeff: [R, B] f32, bias: [d_out] f32
    -> padded [n_dst_p, d_out_p] in out_dtype."""
    num_rels, n_dst_p, n_src_p = adj_p.shape
    n_bases, d_in, d_out = bases.shape
    assert h_p.shape[0] == n_src_p, "activation row padding must match adjacency src padding"
    d_in_p = h_p.shape[1]
    d_out_p = _round_up(d_out, 128)

    vmem_limit = _vmem_limit_bytes()
    budget = int(vmem_limit * 0.8)

    bf16 = jnp.bfloat16
    bases_p = (jnp.zeros((n_bases, d_in_p, d_out_p), bf16)
               .at[:, :d_in, :d_out].set(bases.astype(bf16)))
    bias_p = jnp.zeros((1, d_out_p), jnp.float32).at[0, :d_out].set(bias)

    # Stage 1: HW_b = H @ V_b  (B << R matmuls; H and V streamed once each).
    tile_n = _choose_proj_tile(n_src_p, d_in_p, d_out_p, n_bases, budget)
    hw = basis_project(h_p, bases_p, tile_n=tile_n, vmem_limit=vmem_limit)

    # Stage 2: A'_b = sum_r coeff[r,b] A_r.  By linearity
    #   sum_r A_r (H W_r) == sum_b A'_b (H V_b),
    # so the aggregation below runs over B (not R) and no [R,N,D] HWr is materialized.
    tmc, tkc = _choose_tiles_2d(
        n_dst_p, n_src_p,
        lambda tm, tk: _combine_footprint(tm, tk, n_bases), budget)
    adj_b = combine_adjacency(adj_p, coeff, tile_m=tmc, tile_k=tkc,
                              vmem_limit=vmem_limit)

    # Stage 3: fused long-K aggregation + bias + activation.
    out_bytes = jnp.dtype(out_dtype).itemsize
    tile_m, tile_k = _choose_tiles_2d(
        n_dst_p, n_src_p,
        lambda tm, tk: _agg_footprint(tm, tk, d_out_p, out_bytes, 2), budget)
    steps = (n_dst_p // tile_m) * n_bases * (n_src_p // tile_k)
    a_buffers = 3 if (steps >= 3 and
                      _agg_footprint(tile_m, tile_k, d_out_p, out_bytes, 3) <= budget) else 2
    out_p = rgcn_aggregate(adj_b, hw, bias_p, apply_relu=apply_relu,
                           out_dtype=out_dtype, tile_m=tile_m, tile_k=tile_k,
                           a_buffers=a_buffers, vmem_limit=vmem_limit,
                           core_parallel=core_parallel)
    return out_p   # padded; sliced only after the final layer


# ----------------------------------------------------------------------------
# EntityClassify model (forward only)
# ----------------------------------------------------------------------------
class EntityClassifyPallas:
    def __init__(self, key, num_nodes, h_dim, out_dim, num_rels,
                 num_bases=None, num_hidden_layers=1):
        # module defaults reproduced: dropout=0, use_self_loop=False, layer_norm=False
        # TODO(synk): self_loop / layer_norm / dropout branches of RelGraphConv are
        # not exercised (disabled by the module defaults).
        self.num_nodes = num_nodes
        self.h_dim = h_dim
        self.out_dim = out_dim
        self.num_rels = num_rels
        self.num_bases = num_rels if (num_bases is None or num_bases < 0) else num_bases

        dims = [(h_dim, h_dim)] + [(h_dim, h_dim)] * num_hidden_layers + [(h_dim, out_dim)]
        self.layers = []
        for (din, dout) in dims:
            key, k1, k2 = jax.random.split(key, 3)
            bases = jax.random.normal(k1, (self.num_bases, din, dout), jnp.float32) * 0.1
            coeff = jax.random.normal(k2, (num_rels, self.num_bases), jnp.float32) * 0.1
            bias = jnp.zeros((dout,), jnp.float32)
            self.layers.append((bases, coeff, bias))

    def __call__(self, adjs_padded, feats, *, core_parallel=False):
        """adjs_padded: list (one per layer) of padded bf16 per-relation adjacency
        [num_rels, n_p, n_p] from pad_adjacency (hoisted graph prep);
        feats: [N, h_dim] f32."""
        n, h_dim = feats.shape
        n_p = adjs_padded[0].shape[2]
        d_p = _round_up(h_dim, 128)
        # Padded bf16 activations are carried across layers; sliced once at the end.
        # Padded dst rows receive relu(bias) but are annihilated by the zero padded
        # src columns of the next layer's adjacency; padded feature cols stay zero.
        h = (jnp.zeros((n_p, d_p), jnp.bfloat16)
             .at[:n, :h_dim].set(feats.astype(jnp.bfloat16)))
        n_layers = len(self.layers)
        for i, ((bases, coeff, bias), adj_p) in enumerate(zip(self.layers, adjs_padded)):
            last = (i == n_layers - 1)
            h = rgcn_layer(adj_p, h, bases, coeff, bias,
                           apply_relu=not last,
                           out_dtype=jnp.float32 if last else jnp.bfloat16,
                           core_parallel=core_parallel)
        return h[:n, :self.out_dim]


# ----------------------------------------------------------------------------
# Pure-JAX f32 reference for verification
# ----------------------------------------------------------------------------
def rgcn_layer_ref(adj, h, bases, coeff, bias, apply_relu):
    w = jnp.einsum('rb,bio->rio', coeff, bases)              # W_r = sum_b coeff[r,b] V_b
    out = jnp.einsum('rvu,ui,rio->vo', adj, h, w) + bias
    return jnp.maximum(out, 0.0) if apply_relu else out


# ----------------------------------------------------------------------------
# Example graph construction (glue)
# ----------------------------------------------------------------------------
def build_dense_relation_adjacency(num_nodes, num_rels, num_edges, seed):
    rng = np.random.RandomState(seed)
    src = rng.randint(0, num_nodes, size=num_edges)
    dst = rng.randint(0, num_nodes, size=num_edges)
    etype = rng.randint(0, num_rels, size=num_edges)
    # typical RGCN edge norm: 1 / in-degree of destination
    indeg = np.zeros(num_nodes, np.float32)
    np.add.at(indeg, dst, 1.0)
    norm = 1.0 / np.maximum(indeg[dst], 1.0)
    adj = np.zeros((num_rels, num_nodes, num_nodes), np.float32)
    np.add.at(adj, (etype, dst, src), norm)
    return jnp.asarray(adj)


if __name__ == "__main__":
    num_nodes = 64
    h_dim = 32
    out_dim = 16
    num_rels = 4
    num_bases = 2
    num_hidden_layers = 1
    num_edges = 256

    key = jax.random.PRNGKey(0)
    key, kfeat = jax.random.split(key)
    feats = jax.random.normal(kfeat, (num_nodes, h_dim), jnp.float32)

    model = EntityClassifyPallas(key, num_nodes, h_dim, out_dim, num_rels,
                                 num_bases=num_bases,
                                 num_hidden_layers=num_hidden_layers)
    n_layers = len(model.layers)
    adjs = [build_dense_relation_adjacency(num_nodes, num_rels, num_edges, seed=i)
            for i in range(n_layers)]

    # Hoisted graph preprocessing (pad + f32->bf16); reuse across forward calls.
    adjs_p = [jax.block_until_ready(pad_adjacency(a)) for a in adjs]

    out = model(adjs_p, feats)
    out = jax.block_until_ready(out)

    # verify against an f32 pure-JAX reference (bf16 MXU operands / streams with
    # f32 accumulation -> relaxed tolerance)
    h_ref = feats
    for i, ((bases, coeff, bias), adj) in enumerate(zip(model.layers, adjs)):
        h_ref = rgcn_layer_ref(adj, h_ref, bases, coeff, bias,
                               apply_relu=(i < n_layers - 1))
    np.testing.assert_allclose(np.asarray(out), np.asarray(h_ref),
                               rtol=5e-2, atol=1e-2)

    assert out.shape == (num_nodes, out_dim)
    print("KERNEL_OK")
</pallas_src>

<mosaic_0001>
module attributes {stable_mosaic.version = 11 : i64} {
  func.func @_basis_project_kernel(%arg0: i32, %arg1: memref<128x128xbf16, #tpu.memory_space<vmem>>, %arg2: memref<2x128x128xbf16, #tpu.memory_space<vmem>>, %arg3: memref<2x128x128xbf16, #tpu.memory_space<vmem>>) attributes {dimension_semantics = [#tpu.dimension_semantics<parallel>], iteration_bounds = array<i64: 1>, scalar_prefetch = 0 : i64, scratch_operands = 0 : i64, tpu.core_type = #tpu.core_type<tc>, window_params = [{transform_indices = @transform_0, window_bounds = array<i64: 128, 128>}, {pipeline_mode = #tpu.pipeline_mode<synchronous>, transform_indices = @transform_1, window_bounds = array<i64: 2, 128, 128>}, {transform_indices = @transform_2, window_bounds = array<i64: 2, 128, 128>}]} {
    %c0 = arith.constant 0 : index
    %c0_0 = arith.constant 0 : index
    %0 = vector.load %arg1[%c0, %c0_0] : memref<128x128xbf16, #tpu.memory_space<vmem>>, vector<128x128xbf16>
    %c0_1 = arith.constant 0 : index
    %c0_2 = arith.constant 0 : index
    %c0_3 = arith.constant 0 : index
    %1 = vector.load %arg2[%c0_1, %c0_2, %c0_3] : memref<2x128x128xbf16, #tpu.memory_space<vmem>>, vector<1x128x128xbf16>
    %2 = vector.shape_cast %1 : vector<1x128x128xbf16> to vector<128x128xbf16>
    %cst = arith.constant dense<0.000000e+00> : vector<128x128xf32>
    %3 = tpu.matmul %0, %2, %cst {dimension_numbers = #tpu.dot_dimension_numbers<[1], [0], [0], [1], [0, 0, 1, 1], [], []>} : vector<128x128xbf16>, vector<128x128xbf16>, vector<128x128xf32> -> vector<128x128xf32>
    %4 = arith.truncf %3 : vector<128x128xf32> to vector<128x128xbf16>
    %c0_4 = arith.constant 0 : index
    %c0_5 = arith.constant 0 : index
    %c0_6 = arith.constant 0 : index
    %5 = vector.load %arg3[%c0_4, %c0_5, %c0_6] : memref<2x128x128xbf16, #tpu.memory_space<vmem>>, vector<1x128x128xbf16>
    %6 = vector.shape_cast %5 : vector<1x128x128xbf16> to vector<128x128xbf16>
    %7 = vector.shape_cast %4 : vector<128x128xbf16> to vector<1x128x128xbf16>
    tpu.vector_store %arg3[%c0_4, %c0_5, %c0_6], %7 {strides = array<i32>} : memref<2x128x128xbf16, #tpu.memory_space<vmem>>, vector<1x128x128xbf16>,
    %c1 = arith.constant 1 : index
    %c0_7 = arith.constant 0 : index
    %c0_8 = arith.constant 0 : index
    %8 = vector.load %arg2[%c1, %c0_7, %c0_8] : memref<2x128x128xbf16, #tpu.memory_space<vmem>>, vector<1x128x128xbf16>
    %9 = vector.shape_cast %8 : vector<1x128x128xbf16> to vector<128x128xbf16>
    %cst_9 = arith.constant dense<0.000000e+00> : vector<128x128xf32>
    %10 = tpu.matmul %0, %9, %cst_9 {dimension_numbers = #tpu.dot_dimension_numbers<[1], [0], [0], [1], [0, 0, 1, 1], [], []>} : vector<128x128xbf16>, vector<128x128xbf16>, vector<128x128xf32> -> vector<128x128xf32>
    %11 = arith.truncf %10 : vector<128x128xf32> to vector<128x128xbf16>
    %c1_10 = arith.constant 1 : index
    %c0_11 = arith.constant 0 : index
    %c0_12 = arith.constant 0 : index
    %12 = vector.load %arg3[%c1_10, %c0_11, %c0_12] : memref<2x128x128xbf16, #tpu.memory_space<vmem>>, vector<1x128x128xbf16>
    %13 = vector.shape_cast %12 : vector<1x128x128xbf16> to vector<128x128xbf16>
    %14 = vector.shape_cast %11 : vector<128x128xbf16> to vector<1x128x128xbf16>
    tpu.vector_store %arg3[%c1_10, %c0_11, %c0_12], %14 {strides = array<i32>} : memref<2x128x128xbf16, #tpu.memory_space<vmem>>, vector<1x128x128xbf16>,
    return
  }
  func.func @transform_0(%arg0: i32) -> (i32, i32) {
    %c0_i32 = arith.constant 0 : i32
    %c0_i32_0 = arith.constant 0 : i32
    return %arg0, %c0_i32 : i32, i32
  }
  func.func @transform_1(%arg0: i32) -> (i32, i32, i32) {
    %c0_i32 = arith.constant 0 : i32
    %c0_i32_0 = arith.constant 0 : i32
    %c0_i32_1 = arith.constant 0 : i32
    %c0_i32_2 = arith.constant 0 : i32
    return %c0_i32, %c0_i32_0, %c0_i32_1 : i32, i32, i32
  }
  func.func @transform_2(%arg0: i32) -> (i32, i32, i32) {
    %c0_i32 = arith.constant 0 : i32
    %c0_i32_0 = arith.constant 0 : i32
    %c0_i32_1 = arith.constant 0 : i32
    return %c0_i32, %arg0, %c0_i32_0 : i32, i32, i32
  }
}

</mosaic_0001>

<bundles_post_ra>
// kernel: tpu_custom_call.1
= control target key start
LH: loop header
LB: loop body
LE: loop exit
PB: predicated region body
PF: predicated region fallthrough
CT: control target
= control target key end

     0   :  { %7 = vsyncpa [#allocation3], 0  ;;  %s1051_s0 = inlined_call_operand.hbm [shape: bf16[128,128], index: 0, kind: input, shape index: {}]   ;;  %s1052_s1 = inlined_call_operand.hbm [shape: bf16[2,128,128], index: 1, kind: input, shape index: {}]   ;;  %s1053_s2 = inlined_call_operand.hbm [shape: bf16[2,128,128], index: 2, kind: output, shape index: {}]  }
   0x1   :  { %8 = vsyncpa [#allocation6], 0 }
   0x2   :  { %9 = vsyncpa [#allocation4], 0  ;;  %s986_s9 = smov [#allocation2]   ;;  %s914_s13 = scalar_lea.hbm %s1051_s0, 1024 }
   0x3   :  { %s15_s10 = sshll.u32 %s986_s9, 4  ;;  %p915_p0 = scmp.ne.s32.totalorder %s1051_s0, %s914_s13  ;;  %s16_s10 = int_to_ptr.vmem [resolvable:$true] %s15_s10 }
   0x4   :  { %p918_p1 = scmp.lt.u32.totalorder %s914_s13, %s1051_s0 }
   0x6   :  { %p920_p2 = pnand %p918_p1, %p915_p0 }
   0x8   :  { %923 = shalt.err (!%p920_p2)
}
   0x9   :  { %s924_s18 = scalar_lea.vmem %s16_s10, 1024  ;;  %p929_p4 = scmp.lt.s32.totalorder %s16_s10, %s16_s10 }
   0xa   :  { %p925_p3 = scmp.ne.s32.totalorder %s16_s10, %s924_s18  ;;  %p930_p5 = scmp.lt.s32.totalorder %s924_s18, %s924_s18 }
   0xc   :  { %p931_p6 = por %p930_p5, %p929_p4 }
   0xe   :  { %p932_p7 = pnand %p931_p6, %p925_p3 }
  0x10   :  { %935 = shalt.err (!%p932_p7)
}
  0x11   :  { %s987_s19 = smov 64   ;;  %s988_s20 = smov 4  }
  0x12   :  { %21 = dma.hbm_to_vmem [thread:$0]  %s1051_s0, 1024, %s16_s10, [#allocation3], %s987_s19, %s987_s19, %s988_s20  }
  0x13   :  { %s989_s23 = smov [#allocation5]   ;;  %s936_s27 = scalar_lea.hbm %s1052_s1, 2048 }
  0x14   :  { %s27_s24 = sshll.u32 %s989_s23, 4  ;;  %p937_p8 = scmp.ne.s32.totalorder %s1052_s1, %s936_s27  ;;  %s28_s24 = int_to_ptr.vmem [resolvable:$true] %s27_s24 }
  0x15   :  { %p940_p9 = scmp.lt.u32.totalorder %s936_s27, %s1052_s1 }
  0x17   :  { %p942_p10 = pnand %p940_p9, %p937_p8 }
  0x19   :  { %945 = shalt.err (!%p942_p10)
}
  0x1a   :  { %s946_s4 = scalar_lea.vmem %s28_s24, 2048  ;;  %p951_p12 = scmp.lt.s32.totalorder %s28_s24, %s28_s24 }
  0x1b   :  { %p947_p11 = scmp.ne.s32.totalorder %s28_s24, %s946_s4  ;;  %p952_p13 = scmp.lt.s32.totalorder %s946_s4, %s946_s4 }
  0x1d   :  { %p953_p0 = por %p952_p13, %p951_p12 }
  0x1f   :  { %p954_p1 = pnand %p953_p0, %p947_p11 }
  0x21   :  { %957 = shalt.err (!%p954_p1)
}
  0x22   :  { %33 = dma.hbm_to_vmem [thread:$0]  %s1052_s1, 2048, %s28_s24, [#allocation6], %s987_s19, %s987_s19, %s988_s20  }
  0x23   :  { %980 = dma.done.wait [#allocation3], 1024  }
  0x24   :  { %981 = vsyncadd [#allocation3], 4294966272 }
  0x25   :  { %982 = dma.done.wait [#allocation6], 2048  }
  0x26   :  { %983 = vsyncadd [#allocation6], 4294965248  ;;  %v890_v0 = vld [vmem:[#allocation5] sm:$0xff]   ;;  %v892_v2 = vld [vmem:[#allocation5 + $0x8] sm:$0xff]   ;;  %s990_s1 = smov [#allocation7]  }
  0x27   :  { %v891_v1 = vld [vmem:[#allocation5 + $0x40] sm:$0xff]   ;;  %821 = vmatprep.subr.bf16.mxu0 %v890_v0  ;;  %v893_v3 = vld [vmem:[#allocation5 + $0x48] sm:$0xff]   ;;  %v894_v4 = vld [vmem:[#allocation5 + $0x10] sm:$0xff]   ;;  %s594_s6 = sshll.u32 %s990_s1, 4  ;;  %s595_s6 = int_to_ptr.vmem [resolvable:$true] %s594_s6 }
  0x28   :  { %853 = vmatprep.subr.bf16.mxu1 %v891_v1  ;;  %822 = vmatpush3.bf16.msra.mxu0 %v890_v0  ;;  %v895_v5 = vld [vmem:[#allocation5 + $0x50] sm:$0xff]   ;;  %v896_v6 = vld [vmem:[#allocation5 + $0x18] sm:$0xff]   ;;  %v898_v8 = vld [vmem:[#allocation5 + $0x20] sm:$0xff]   ;;  %s958_s7 = scalar_lea.vmem %s595_s6, 2048  ;;  %p963_p3 = scmp.lt.s32.totalorder %s595_s6, %s595_s6 }
  0x29   :  { %854 = vmatpush3.bf16.msra.mxu1 %v891_v1  ;;  %823 = vmatprep.subr.bf16.mxu0 %v892_v2  ;;  %v897_v7 = vld [vmem:[#allocation5 + $0x58] sm:$0xff]   ;;  %v899_v9 = vld [vmem:[#allocation5 + $0x60] sm:$0xff]   ;;  %v900_v10 = vld [vmem:[#allocation5 + $0x28] sm:$0xff]   ;;  %p959_p2 = scmp.ne.s32.totalorder %s595_s6, %s958_s7  ;;  %p964_p4 = scmp.lt.s32.totalorder %s958_s7, %s958_s7 }
  0x2a   :  { %855 = vmatprep.subr.bf16.mxu1 %v893_v3  ;;  %v906_v11 = vld [vmem:[#allocation2] sm:$0xff]   ;;  %v901_v12 = vld [vmem:[#allocation5 + $0x68] sm:$0xff]   ;;  %v902_v13 = vld [vmem:[#allocation5 + $0x30] sm:$0xff]  }
  0x2b   :  { %837 = vmatprep.mubr.bf16.mxu0 %v906_v11  ;;  %869 = vmatprep.mubr.bf16.mxu1 %v906_v11  ;;  %v903_v14 = vld [vmem:[#allocation5 + $0x70] sm:$0xff]   ;;  %v904_v15 = vld [vmem:[#allocation5 + $0x38] sm:$0xff]   ;;  %v907_v17 = vld [vmem:[#allocation2 + $0x8] sm:$0xff]   ;;  %p965_p5 = por %p964_p4, %p963_p3 }
  0x2c   :  { %824 = vmatpush3.bf16.msra.mxu0 %v892_v2  ;;  %v905_v16 = vld [vmem:[#allocation5 + $0x78] sm:$0xff]   ;;  %v908_v18 = vld [vmem:[#allocation2 + $0x10] sm:$0xff]   ;;  %v910_v20 = vld [vmem:[#allocation2 + $0x20] sm:$0xff]  }
  0x2d   :  { %856 = vmatpush3.bf16.msra.mxu1 %v893_v3  ;;  %825 = vmatprep.subr.bf16.mxu0 %v894_v4  ;;  %v909_v19 = vld [vmem:[#allocation2 + $0x18] sm:$0xff]   ;;  %v911_v21 = vld [vmem:[#allocation2 + $0x28] sm:$0xff]   ;;  %v912_v22 = vld [vmem:[#allocation2 + $0x30] sm:$0xff]   ;;  %p966_p6 = pnand %p965_p5, %p959_p2 }
  0x2e   :  { %857 = vmatprep.subr.bf16.mxu1 %v895_v5  ;;  %v913_v23 = vld [vmem:[#allocation2 + $0x38] sm:$0xff]  }
  0x30   :  { %826 = vmatpush3.bf16.msra.mxu0 %v894_v4 }
  0x31   :  { %858 = vmatpush3.bf16.msra.mxu1 %v895_v5  ;;  %827 = vmatprep.subr.bf16.mxu0 %v896_v6 }
  0x32   :  { %859 = vmatprep.subr.bf16.mxu1 %v897_v7 }
  0x34   :  { %828 = vmatpush3.bf16.msra.mxu0 %v896_v6 }
  0x35   :  { %860 = vmatpush3.bf16.msra.mxu1 %v897_v7  ;;  %829 = vmatprep.subr.bf16.mxu0 %v898_v8 }
  0x36   :  { %861 = vmatprep.subr.bf16.mxu1 %v899_v9 }
  0x38   :  { %830 = vmatpush3.bf16.msra.mxu0 %v898_v8 }
  0x39   :  { %862 = vmatpush3.bf16.msra.mxu1 %v899_v9  ;;  %831 = vmatprep.subr.bf16.mxu0 %v900_v10 }
  0x3a   :  { %863 = vmatprep.subr.bf16.mxu1 %v901_v12 }
  0x3c   :  { %832 = vmatpush3.bf16.msra.mxu0 %v900_v10 }
  0x3d   :  { %864 = vmatpush3.bf16.msra.mxu1 %v901_v12  ;;  %833 = vmatprep.subr.bf16.mxu0 %v902_v13 }
  0x3e   :  { %865 = vmatprep.subr.bf16.mxu1 %v903_v14 }
  0x40   :  { %834 = vmatpush3.bf16.msra.mxu0 %v902_v13 }
  0x41   :  { %866 = vmatpush3.bf16.msra.mxu1 %v903_v14  ;;  %835 = vmatprep.subr.bf16.mxu0 %v904_v15 }
  0x42   :  { %867 = vmatprep.subr.bf16.mxu1 %v905_v16 }
  0x44   :  { %836 = vmatpush3.bf16.msra.mxu0 %v904_v15 }
  0x45   :  { %868 = vmatpush3.bf16.msra.mxu1 %v905_v16 }
  0x47   :  { %838 = vmatmul.mubr.bf16.vlgmr.msra.gmra.mrb[0].mxu0 %v907_v17 }
  0x48   :  { %870 = vmatmul.mubr.bf16.vlgmr.msra.gmra.mrb[0].mxu1 %v907_v17  ;;  %841 = vmatprep.mubr.bf16.mxu0 %v908_v18 }
  0x49   :  { %873 = vmatprep.mubr.bf16.mxu1 %v908_v18 }
  0x4f   :  { %842 = vmatmul.mubr.bf16.gmra.mrb[4].mxu0 %v909_v19 }
  0x50   :  { %874 = vmatmul.mubr.bf16.gmra.mrb[4].mxu1 %v909_v19  ;;  %845 = vmatprep.mubr.bf16.mxu0 %v910_v20 }
  0x51   :  { %877 = vmatprep.mubr.bf16.mxu1 %v910_v20 }
  0x57   :  { %846 = vmatmul.mubr.bf16.gmra.mrb[8].mxu0 %v911_v21 }
  0x58   :  { %878 = vmatmul.mubr.bf16.gmra.mrb[8].mxu1 %v911_v21  ;;  %849 = vmatprep.mubr.bf16.mxu0 %v912_v22 }
  0x59   :  { %881 = vmatprep.mubr.bf16.mxu1 %v912_v22 }
  0x5f   :  { %850 = vmatmul.mubr.bf16.gmra.mrb[12].mxu0 %v913_v23 }
  0x60   :  { %882 = vmatmul.mubr.bf16.gmra.mrb[12].mxu1 %v913_v23 }
 0x11a   :  { %v839_v24 = vpop.f32.mrb[0].mxu0 }
 0x11b   :  { %v871_v25 = vpop.f32.mrb[0].mxu1  ;;  %v203_v26 = vpop.f32.mrb[1].mxu0 }
 0x11c   :  { %v445_v27 = vpop.f32.mrb[1].mxu1  ;;  %v840_v28 = vpop.f32.mrb[2].mxu0 }
 0x11d   :  { %v703_v29 = vpack.c.bf16 %v840_v28, %v839_v24  ;;  %v872_v30 = vpop.f32.mrb[2].mxu1  ;;  %v206_v31 = vpop.f32.mrb[3].mxu0 }
 0x11e   :  { %v743_v32 = vpack.c.bf16 %v872_v30, %v871_v25  ;;  %v698_v33 = vpack.c.bf16 %v206_v31, %v203_v26  ;;  %v448_v34 = vpop.f32.mrb[3].mxu1 }
 0x11f   :  { %775 = vst [vmem:[#allocation7 + $0x8] sm:$0xff] %v703_v29   ;;  %v738_v35 = vpack.c.bf16 %v448_v34, %v445_v27 }
 0x120   :  { %782 = vst [vmem:[#allocation7 + $0x48] sm:$0xff] %v743_v32   ;;  %699 = vst [vmem:[#allocation7] sm:$0xff] %v698_v33  }
 0x121   :  { %739 = vst [vmem:[#allocation7 + $0x40] sm:$0xff] %v738_v35  }
 0x122   :  { %v843_v36 = vpop.f32.mrb[4].mxu0 }
 0x123   :  { %v875_v37 = vpop.f32.mrb[4].mxu1  ;;  %v219_v38 = vpop.f32.mrb[5].mxu0 }
 0x124   :  { %v461_v39 = vpop.f32.mrb[5].mxu1  ;;  %v844_v40 = vpop.f32.mrb[6].mxu0 }
 0x125   :  { %v713_v41 = vpack.c.bf16 %v844_v40, %v843_v36  ;;  %v876_v42 = vpop.f32.mrb[6].mxu1  ;;  %v222_v43 = vpop.f32.mrb[7].mxu0 }
 0x126   :  { %v753_v44 = vpack.c.bf16 %v876_v42, %v875_v37  ;;  %v708_v45 = vpack.c.bf16 %v222_v43, %v219_v38  ;;  %v464_v46 = vpop.f32.mrb[7].mxu1 }
 0x127   :  { %777 = vst [vmem:[#allocation7 + $0x18] sm:$0xff] %v713_v41   ;;  %v748_v47 = vpack.c.bf16 %v464_v46, %v461_v39 }
 0x128   :  { %784 = vst [vmem:[#allocation7 + $0x58] sm:$0xff] %v753_v44   ;;  %776 = vst [vmem:[#allocation7 + $0x10] sm:$0xff] %v708_v45  }
 0x129   :  { %783 = vst [vmem:[#allocation7 + $0x50] sm:$0xff] %v748_v47  }
 0x12a   :  { %v847_v48 = vpop.f32.mrb[8].mxu0 }
 0x12b   :  { %v879_v49 = vpop.f32.mrb[8].mxu1  ;;  %v235_v50 = vpop.f32.mrb[9].mxu0 }
 0x12c   :  { %v477_v51 = vpop.f32.mrb[9].mxu1  ;;  %v848_v52 = vpop.f32.mrb[10].mxu0 }
 0x12d   :  { %v723_v53 = vpack.c.bf16 %v848_v52, %v847_v48  ;;  %v880_v54 = vpop.f32.mrb[10].mxu1  ;;  %v238_v55 = vpop.f32.mrb[11].mxu0 }
 0x12e   :  { %v763_v56 = vpack.c.bf16 %v880_v54, %v879_v49  ;;  %v718_v57 = vpack.c.bf16 %v238_v55, %v235_v50  ;;  %v480_v58 = vpop.f32.mrb[11].mxu1 }
 0x12f   :  { %779 = vst [vmem:[#allocation7 + $0x28] sm:$0xff] %v723_v53   ;;  %v758_v59 = vpack.c.bf16 %v480_v58, %v477_v51 }
 0x130   :  { %786 = vst [vmem:[#allocation7 + $0x68] sm:$0xff] %v763_v56   ;;  %778 = vst [vmem:[#allocation7 + $0x20] sm:$0xff] %v718_v57  }
 0x131   :  { %785 = vst [vmem:[#allocation7 + $0x60] sm:$0xff] %v758_v59  }
 0x132   :  { %v851_v60 = vpop.f32.mrb[12].mxu0 }
 0x133   :  { %v883_v61 = vpop.f32.mrb[12].mxu1  ;;  %v251_v62 = vpop.f32.mrb[13].mxu0 }
 0x134   :  { %v493_v63 = vpop.f32.mrb[13].mxu1  ;;  %v852_v0 = vpop.f32.mrb[14].mxu0 }
 0x135   :  { %v733_v1 = vpack.c.bf16 %v852_v0, %v851_v60  ;;  %v884_v2 = vpop.f32.mrb[14].mxu1  ;;  %v254_v3 = vpop.f32.mrb[15].mxu0 }
 0x136   :  { %v773_v4 = vpack.c.bf16 %v884_v2, %v883_v61  ;;  %v728_v5 = vpack.c.bf16 %v254_v3, %v251_v62  ;;  %v496_v6 = vpop.f32.mrb[15].mxu1 }
 0x137   :  { %781 = vst [vmem:[#allocation7 + $0x38] sm:$0xff] %v733_v1   ;;  %v768_v7 = vpack.c.bf16 %v496_v6, %v493_v63 }
 0x138   :  { %788 = vst [vmem:[#allocation7 + $0x78] sm:$0xff] %v773_v4   ;;  %780 = vst [vmem:[#allocation7 + $0x30] sm:$0xff] %v728_v5  }
 0x139   :  { %787 = vst [vmem:[#allocation7 + $0x70] sm:$0xff] %v768_v7  }
 0x13a   :  { %969 = shalt.err (!%p966_p6)
}
 0x13b   :  { %s970_s10 = scalar_lea.hbm %s1053_s2, 2048 }
 0x13c   :  { %p971_p7 = scmp.ne.s32.totalorder %s1053_s2, %s970_s10  ;;  %p974_p8 = scmp.lt.u32.totalorder %s970_s10, %s1053_s2 }
 0x13e   :  { %p976_p9 = pnand %p974_p8, %p971_p7 }
 0x140   :  { %979 = shalt.err (!%p976_p9)
}
 0x141   :  { %600 = dma.vmem_to_hbm [thread:$0]  %s595_s6, 2048, %s1053_s2, [#allocation4], %s987_s19, %s987_s19, %s988_s20  }
 0x142   :  { %984 = dma.done.wait [#allocation4], 2048  }
 0x143   :  { %985 = vsyncadd [#allocation4], 4294965248 }
 0x144   :  { %604 = vsyncpa [#allocation3], 1 }
 0x145   :  { %605 = vsyncpa [#allocation6], 1 }
 0x146   :  { %606 = vsyncpa [#allocation4], 1 }

</bundles_post_ra>
